<compile_context>
chip_gen: v7x
topology: tpu7x:2x2x1
jax: 0.10.0
libtpu: 0.0.40
codegen_flags: <defaults>
</compile_context>

<pallas_src>
import jax
import jax.numpy as jnp
from jax.experimental import pallas as pl
from jax.experimental.pallas import tpu as pltpu

_LANE = 128
_MAX_TILE_ROWS = 2048  # 2048*128*4 B = 1 MiB per f32 buffer; multiple of 8/16/32 sublanes


def _logreg_kernel(wb_ref, x_ref, o_ref):
    # wb_ref: (2,) f32 in SMEM = [weight, bias]; x_ref / o_ref: (tile_r, 128) VMEM tiles.
    x = x_ref[...].astype(jnp.float32)
    w = wb_ref[0]
    b = wb_ref[1]
    z = x * w + b
    # Numerically stable sigmoid: exp only ever sees non-positive arguments (EUP),
    # divide is exact (compute is hidden under the streaming DMAs anyway).
    ez = jnp.exp(-jnp.abs(z))
    y = jnp.where(z >= 0, 1.0, ez) / (1.0 + ez)
    o_ref[...] = y.astype(o_ref.dtype)


def logistic_regression(x, weight, bias, *, small_n_xla_threshold: int = 0):
    """sigmoid(x @ weight.T + bias) for nn.Linear(1, 1).  x: (..., 1) -> same shape."""
    orig_shape = x.shape
    n = x.size
    w = weight.reshape(()).astype(jnp.float32)
    b = bias.reshape(()).astype(jnp.float32)

    # Optional plain-XLA path for tiny inputs where pallas_call launch overhead
    # dominates; production callers can pass e.g. small_n_xla_threshold=1 << 17.
    if n < small_n_xla_threshold:
        y = jax.nn.sigmoid(x.astype(jnp.float32) * w + b)
        return y.astype(x.dtype).reshape(orig_shape)

    # Lane-dense layout: flatten to (rows, 128).  Only the sub-128 tail (if any) is
    # padded; rows are NOT rounded up to the tile size — the boundary grid step is a
    # masked partial block, so no extra wrapper-side HBM copies for aligned N.
    rows = pl.cdiv(n, _LANE)
    n_pad = rows * _LANE
    x_flat = x.reshape(-1)
    if n_pad != n:
        x_flat = jnp.pad(x_flat, (0, n_pad - n))
    x2d = x_flat.reshape(rows, _LANE)

    # Full-array block when it fits in one tile (always a legal block shape);
    # otherwise 2048-row tiles (multiple of 8/16/32 sublanes -> legal for bf16/int8 too).
    tile_r = rows if rows <= _MAX_TILE_ROWS else _MAX_TILE_ROWS
    grid = (pl.cdiv(rows, tile_r),)

    wb = jnp.stack([w, b])  # (2,) f32 scalars, presented to the kernel in SMEM

    out2d = pl.pallas_call(
        _logreg_kernel,
        out_shape=jax.ShapeDtypeStruct((rows, _LANE), x.dtype),
        grid=grid,
        in_specs=[
            pl.BlockSpec(memory_space=pltpu.MemorySpace.SMEM),    # [weight, bias]
            pl.BlockSpec((tile_r, _LANE), lambda i: (i, 0)),      # x row tiles
        ],
        out_specs=pl.BlockSpec((tile_r, _LANE), lambda i: (i, 0)),
        compiler_params=pltpu.CompilerParams(
            # Row tiles are independent; harmless no-op on single-TC chips.
            dimension_semantics=("parallel",),
        ),
    )(wb, x2d)

    if n_pad != n:
        return out2d.reshape(-1)[:n].reshape(orig_shape)
    return out2d.reshape(orig_shape)


if __name__ == "__main__":
    key = jax.random.PRNGKey(0)
    kx, kw, kb = jax.random.split(key, 3)

    # nn.Linear(1, 1) parameters: weight (1, 1), bias (1,)
    weight = jax.random.uniform(kw, (1, 1), jnp.float32, minval=-1.0, maxval=1.0)
    bias = jax.random.uniform(kb, (1,), jnp.float32, minval=-1.0, maxval=1.0)

    # Small batch of scalar features, shape (8, 1)
    x = jax.random.normal(kx, (8, 1), jnp.float32)

    y = logistic_regression(x, weight, bias)
    y = jax.block_until_ready(y)

    # Reference check in plain JAX (kernel uses exact math -> tight tolerance)
    y_ref = jax.nn.sigmoid(x @ weight.T + bias)
    assert y.shape == (8, 1)
    assert jnp.allclose(y, y_ref, atol=1e-4, rtol=1e-4), "mismatch vs reference"

    print("KERNEL_OK")
</pallas_src>

<mosaic_0001>
module attributes {stable_mosaic.version = 11 : i64} {
  func.func @_logreg_kernel(%arg0: i32, %arg1: memref<2xf32, #tpu.memory_space<smem>>, %arg2: memref<1x128xf32, #tpu.memory_space<vmem>>, %arg3: memref<1x128xf32, #tpu.memory_space<vmem>>) attributes {dimension_semantics = [#tpu.dimension_semantics<parallel>], iteration_bounds = array<i64: 1>, scalar_prefetch = 0 : i64, scratch_operands = 0 : i64, tpu.core_type = #tpu.core_type<tc>, window_params = [{transform_indices = @transform_0, window_bounds = array<i64: 2>}, {transform_indices = @transform_1, window_bounds = array<i64: 1, 128>}, {transform_indices = @transform_2, window_bounds = array<i64: 1, 128>}]} {
    %c0 = arith.constant 0 : index
    %c0_0 = arith.constant 0 : index
    %0 = vector.load %arg2[%c0, %c0_0] : memref<1x128xf32, #tpu.memory_space<vmem>>, vector<1x128xf32>
    %c0_1 = arith.constant 0 : index
    %1 = memref.load %arg1[%c0_1] : memref<2xf32, #tpu.memory_space<smem>>
    %c1 = arith.constant 1 : index
    %2 = memref.load %arg1[%c1] : memref<2xf32, #tpu.memory_space<smem>>
    %3 = vector.broadcast %1 : f32 to vector<1x128xf32>
    %4 = arith.mulf %0, %3 : vector<1x128xf32>
    %5 = vector.broadcast %2 : f32 to vector<1x128xf32>
    %6 = arith.addf %4, %5 : vector<1x128xf32>
    %7 = math.absf %6 : vector<1x128xf32>
    %cst = arith.constant 0.000000e+00 : f32
    %8 = vector.broadcast %cst : f32 to vector<1x128xf32>
    %9 = arith.subf %8, %7 : vector<1x128xf32>
    %10 = math.exp %9 : vector<1x128xf32>
    %cst_2 = arith.constant 0.000000e+00 : f32
    %11 = vector.broadcast %cst_2 : f32 to vector<1x128xf32>
    %12 = arith.cmpf oge, %6, %11 : vector<1x128xf32>
    %cst_3 = arith.constant 1.000000e+00 : f32
    %13 = vector.broadcast %cst_3 : f32 to vector<1x128xf32>
    %14 = arith.select %12, %13, %10 : vector<1x128xi1>, vector<1x128xf32>
    %cst_4 = arith.constant 1.000000e+00 : f32
    %15 = vector.broadcast %cst_4 : f32 to vector<1x128xf32>
    %16 = arith.addf %15, %10 : vector<1x128xf32>
    %17 = arith.divf %14, %16 : vector<1x128xf32>
    %c0_5 = arith.constant 0 : index
    %c0_6 = arith.constant 0 : index
    %18 = vector.load %arg3[%c0_5, %c0_6] : memref<1x128xf32, #tpu.memory_space<vmem>>, vector<1x128xf32>
    tpu.vector_store %arg3[%c0_5, %c0_6], %17 {strides = array<i32>} : memref<1x128xf32, #tpu.memory_space<vmem>>, vector<1x128xf32>,
    return
  }
  func.func @transform_0(%arg0: i32) -> i32 {
    %c0_i32 = arith.constant 0 : i32
    %c0_i32_0 = arith.constant 0 : i32
    return %c0_i32 : i32
  }
  func.func @transform_1(%arg0: i32) -> (i32, i32) {
    %c0_i32 = arith.constant 0 : i32
    %c0_i32_0 = arith.constant 0 : i32
    return %arg0, %c0_i32 : i32, i32
  }
  func.func @transform_2(%arg0: i32) -> (i32, i32) {
    %c0_i32 = arith.constant 0 : i32
    %c0_i32_0 = arith.constant 0 : i32
    return %arg0, %c0_i32 : i32, i32
  }
}

</mosaic_0001>

<bundles_post_ra>
// kernel: tpu_custom_call.1
= control target key start
LH: loop header
LB: loop body
LE: loop exit
PB: predicated region body
PF: predicated region fallthrough
CT: control target
= control target key end

     0   :  { %7 = vsyncpa [#allocation4], 0  ;;  %s142_s0 = inlined_call_operand.hbm [shape: f32[2], index: 0, kind: input, shape index: {}]   ;;  %s143_s1 = inlined_call_operand.vmem [shape: f32[1,128], index: 1, kind: input, shape index: {}]   ;;  %s144_s2 = inlined_call_operand.hbm [shape: f32[1,128], index: 2, kind: output, shape index: {}]  }
   0x1   :  { %8 = vsyncpa [#allocation3], 0  ;;  %s62_s11 = scalar_lea.hbm %s142_s0, 16 }
   0x2   :  { %p63_p0 = scmp.ne.s32.totalorder %s142_s0, %s62_s11  ;;  %p66_p1 = scmp.lt.u32.totalorder %s62_s11, %s142_s0 }
   0x4   :  { %p68_p2 = pnand %p66_p1, %p63_p0 }
   0x6   :  { %71 = shalt.err (!%p68_p2)
}
   0x7   :  { %s98_s16 = smov [#allocation2]  }
   0x8   :  { %16 = dma.hbm_to_smem %s142_s0, 16, %s98_s16, [#allocation4]  }
   0x9   :  { %94 = dma.done.wait [#allocation4], 16  }
   0xa   :  { %95 = vsyncadd [#allocation4], 4294967280 }
   0xb   :  { %22 = sfence }
   0xc   :  { %s24_s19 = sld [smem:[#allocation2]]  ;;  %s55_s20 = sld [smem:[#allocation2 + $0x1]]  ;;  %v23_v0 = vld [vmem:[%s143_s1] sm:$0x1] }
   0xd   :  { %s99_s0 = smov [#allocation5]  }
   0xe   :  { %s46_s23 = sshll.u32 %s99_s0, 4  ;;  %s47_s23 = int_to_ptr.vmem [resolvable:$true] %s46_s23 }
   0xf   :  { %s72_s1 = scalar_lea.vmem %s47_s23, 16  ;;  %s76_s24 = scalar_lea.vmem %s47_s23, 32 }
  0x10   :  { %p73_p3 = scmp.ne.s32.totalorder %s47_s23, %s72_s1  ;;  %p77_p4 = scmp.lt.s32.totalorder %s47_s23, %s47_s23 }
  0x11   :  { %p78_p5 = scmp.lt.s32.totalorder %s76_s24, %s72_s1 }
  0x12   :  { %v26_v1 = vstv %s24_s19  ;;  %v28_v2 = vstv %s55_s20 }
  0x13   :  { %v27_v3 = vmul.f32 %v26_v1, %v23_v0  ;;  %p79_p6 = por %p78_p5, %p77_p4 }
  0x15   :  { %v29_v4 = vadd.f32 %v28_v2, %v27_v3  ;;  %p80_p7 = pnand %p79_p6, %p73_p3 }
  0x17   :  { %v30_v5 = vand.u32 2147483647, %v29_v4  ;;  %vm34_vm0 = vcmp.ge.f32.partialorder %v29_v4, 0.0 }
  0x19   :  { %v31_v6 = vsub.f32 0.0, %v30_v5 }
  0x1b   :  { %v32_v7 = vmul.f32 1.442695, %v31_v6 }
  0x1d   :  { %58 = vpow2.f32 %v32_v7 }
  0x27   :  { %v59_v8 = vpop.eup %58 }
  0x28   :  { %v36_v9 = vadd.f32 1.0, %v59_v8  ;;  %v35_v10 = vsel %vm34_vm0, 1.0, %v59_v8 }
  0x2a   :  { %60 = vrcp.f32 %v36_v9 }
  0x34   :  { %v61_v11 = vpop.eup %60 }
  0x35   :  { %v38_v12 = vmul.f32 %v61_v11, %v35_v10 }
  0x37   :  { %39 = vst [vmem:[#allocation5] sm:$0x1] %v38_v12 }
  0x38   :  { %83 = shalt.err (!%p80_p7)
}
  0x39   :  { %s84_s27 = scalar_lea.hbm %s144_s2, 16 }
  0x3a   :  { %p85_p8 = scmp.ne.s32.totalorder %s144_s2, %s84_s27  ;;  %p88_p9 = scmp.lt.u32.totalorder %s84_s27, %s144_s2 }
  0x3c   :  { %p90_p10 = pnand %p88_p9, %p85_p8 }
  0x3e   :  { %93 = shalt.err (!%p90_p10)
}
  0x3f   :  { %49 = dma.vmem_to_hbm [thread:$0]  %s47_s23, 16, %s144_s2, [#allocation3]  }
  0x40   :  { %96 = dma.done.wait [#allocation3], 16  }
  0x41   :  { %97 = vsyncadd [#allocation3], 4294967280 }
  0x42   :  { %53 = vsyncpa [#allocation3], 1 }
  0x43   :  { %54 = vsyncpa [#allocation4], 1 }

</bundles_post_ra>
